<compile_context>
chip_gen: v6e
topology: v6e:2x2x1
jax: 0.10.0
libtpu: 0.0.40
codegen_flags: <defaults>
</compile_context>

<pallas_src>
import functools

import jax
import jax.numpy as jnp
from jax.experimental import pallas as pl
from jax.experimental.pallas import tpu as pltpu

KERNEL_SIZE = 7
PAD = KERNEL_SIZE // 2


def _spatial_attention_kernel(band_ref, x_ref, o_ref, lhs_ref, *, ksize, pad, nb, h):
    """One batch group: build stacked-K shifted LHS, one MXU dot, sigmoid, store.

    band_ref: (k*Wp, Wp)   bf16  stacked banded conv matrices (grid-resident)
    x_ref:    (1, nb*h, Wp) f32  nb images stacked along the sublane axis
    o_ref:    (1, nb*h, Wp) f32
    lhs_ref:  (nb*h, k*Wp)  f32  scratch: the k H-shifted copies of the input
    """
    wp = o_ref.shape[-1]

    # Build lhs[:, ki*Wp:(ki+1)*Wp] = x shifted by (ki - pad) rows, zero-filled at
    # the H boundary of every folded batch element (no cross-batch bleed).
    for ki in range(ksize):
        shift = ki - pad
        src_lo = max(0, shift)
        dst_lo = max(0, -shift)
        n_rows = h - abs(shift)
        c0, c1 = ki * wp, (ki + 1) * wp
        for b in range(nb):
            r0 = b * h
            if n_rows <= 0:
                # Degenerate tiny-H case: whole column block is conv padding.
                lhs_ref[r0:r0 + h, c0:c1] = jnp.zeros((h, wp), lhs_ref.dtype)
                continue
            lhs_ref[r0 + dst_lo:r0 + dst_lo + n_rows, c0:c1] = (
                x_ref[0, r0 + src_lo:r0 + src_lo + n_rows, :])
            # Zero the few halo rows every step (cheap) so the grid axis can stay
            # "parallel" on multi-TensorCore chips (no step-0-only init hazard).
            if dst_lo > 0:
                lhs_ref[r0:r0 + dst_lo, c0:c1] = jnp.zeros((dst_lo, wp), lhs_ref.dtype)
            tail = h - dst_lo - n_rows
            if tail > 0:
                lhs_ref[r0 + h - tail:r0 + h, c0:c1] = jnp.zeros((tail, wp),
                                                                 lhs_ref.dtype)

    # The whole 7x7 conv as ONE large-K bf16 MXU matmul with f32 accumulation.
    acc = jnp.dot(lhs_ref[...].astype(jnp.bfloat16), band_ref[...],
                  preferred_element_type=jnp.float32)
    o_ref[0] = jax.nn.sigmoid(acc).astype(o_ref.dtype)


def _band_matrices(w2d, wp):
    """(k*Wp, Wp) stacked bands: band[ki*Wp + j', j] = w[ki, j' - j + pad] (else 0).

    W-direction zero padding of the conv is implicit: out-of-range taps are simply
    absent from the band, and the extra lanes [W, Wp) of the padded input are zero.
    """
    k = w2d.shape[-1]
    pad = k // 2
    idx = jnp.arange(wp)
    d = idx[:, None] - idx[None, :] + pad                   # (Wp, Wp) tap index
    valid = (d >= 0) & (d < k)
    band = jnp.where(valid[None, :, :], w2d[:, jnp.clip(d, 0, k - 1)], 0.0)  # (k,Wp,Wp)
    return band.reshape(k * wp, wp)


def _pick_batch_fold(n, h, max_rows=256, max_fold=8):
    """Largest divisor nb of n with nb*h <= max_rows (bounds unrolled code & VMEM)."""
    best = 1
    for nb in range(1, min(n, max_fold) + 1):
        if n % nb == 0 and nb * h <= max_rows:
            best = nb
    return best


def spatial_attention(x_nchw, weight):
    """x_nchw: (N, 1, H, W) float32; weight: (1, 1, k, k) float32 -> (N, 1, H, W)."""
    N, C, H, W = x_nchw.shape
    assert C == 1, "SpatialAttention conv expects a single input channel"
    k = weight.shape[-1]
    assert k % 2 == 1, "odd kernel size assumed (Conv2d padding=k//2)"
    pad = k // 2

    wp = max(128, ((W + 127) // 128) * 128)   # lane-dense width (multiple of 128)
    nb = _pick_batch_fold(N, H)               # batch folded into the sublane (M) axis
    g = N // nb
    m = nb * H

    band = _band_matrices(weight[0, 0].astype(jnp.float32), wp).astype(jnp.bfloat16)

    # Layout plumbing is free reshapes only (no transpose): (N,1,H,W) -> (G, nb*H, Wp).
    x = x_nchw.reshape(N, H, W).astype(jnp.float32)
    if wp != W:
        x = jnp.pad(x, ((0, 0), (0, 0), (0, wp - W)))
    x = x.reshape(g, m, wp)

    out = pl.pallas_call(
        functools.partial(_spatial_attention_kernel, ksize=k, pad=pad, nb=nb, h=H),
        out_shape=jax.ShapeDtypeStruct((g, m, wp), jnp.float32),
        grid_spec=pltpu.PrefetchScalarGridSpec(
            num_scalar_prefetch=0,
            grid=(g,),
            in_specs=[
                # Band: same block every step -> stays resident in VMEM (tiny, bf16).
                pl.BlockSpec((k * wp, wp), lambda i: (0, 0)),
                # One lane-dense folded batch group per grid step.
                pl.BlockSpec((1, m, wp), lambda i: (i, 0, 0)),
            ],
            out_specs=pl.BlockSpec((1, m, wp), lambda i: (i, 0, 0)),
            scratch_shapes=[pltpu.VMEM((m, k * wp), jnp.float32)],
        ),
        compiler_params=pltpu.CompilerParams(
            dimension_semantics=("parallel",),
            vmem_limit_bytes=32 * 1024 * 1024),
    )(band, x)

    # Drop the lane padding and restore NCHW (free reshape + one cheap slice).
    return out.reshape(N, H, wp)[:, :, :W].reshape(N, 1, H, W)


if __name__ == "__main__":
    key = jax.random.PRNGKey(0)
    k_w, k_x = jax.random.split(key)

    # Deterministic synthetic conv weight, Conv2d(1, 1, 7) shape: (1, 1, 7, 7).
    weight = jax.random.normal(k_w, (1, 1, KERNEL_SIZE, KERNEL_SIZE),
                               dtype=jnp.float32) * 0.1
    # Input consistent with the module's forward: single-channel NCHW.
    x = jax.random.normal(k_x, (2, 1, 16, 16), dtype=jnp.float32)

    y = spatial_attention(x, weight)
    jax.block_until_ready(y)

    # Cross-check against XLA's conv + sigmoid (same semantics as the PyTorch module).
    ref = jax.nn.sigmoid(
        jax.lax.conv_general_dilated(
            x, weight, window_strides=(1, 1), padding=((PAD, PAD), (PAD, PAD)),
            dimension_numbers=("NCHW", "OIHW", "NCHW")))
    assert y.shape == (2, 1, 16, 16)
    # bf16 MXU operands (f32 accumulation) -> loosened tolerance vs the f32 reference.
    assert jnp.allclose(y, ref, atol=2e-2, rtol=0.0), float(jnp.max(jnp.abs(y - ref)))

    print("KERNEL_OK")
</pallas_src>

<mosaic_0001>
module attributes {stable_mosaic.version = 11 : i64} {
  func.func @_spatial_attention_kernel(%arg0: i32, %arg1: memref<896x128xbf16, #tpu.memory_space<vmem>>, %arg2: memref<1x32x128xf32, #tpu.memory_space<vmem>>, %arg3: memref<1x32x128xf32, #tpu.memory_space<vmem>>, %arg4: memref<32x896xf32, #tpu.memory_space<vmem>>) attributes {dimension_semantics = [#tpu.dimension_semantics<parallel>], iteration_bounds = array<i64: 1>, scalar_prefetch = 0 : i64, scratch_operands = 1 : i64, tpu.core_type = #tpu.core_type<tc>, window_params = [{pipeline_mode = #tpu.pipeline_mode<synchronous>, transform_indices = @transform_0, window_bounds = array<i64: 896, 128>}, {transform_indices = @transform_1, window_bounds = array<i64: 1, 32, 128>}, {transform_indices = @transform_2, window_bounds = array<i64: 1, 32, 128>}]} {
    %c0 = arith.constant 0 : index
    %c0_0 = arith.constant 0 : index
    %c0_1 = arith.constant 0 : index
    %0 = vector.load %arg2[%c0, %c0_0, %c0_1] : memref<1x32x128xf32, #tpu.memory_space<vmem>>, vector<1x13x128xf32>
    %1 = vector.shape_cast %0 : vector<1x13x128xf32> to vector<13x128xf32>
    %c3 = arith.constant 3 : index
    %c0_2 = arith.constant 0 : index
    %2 = vector.load %arg4[%c3, %c0_2] : memref<32x896xf32, #tpu.memory_space<vmem>>, vector<13x128xf32>
    tpu.vector_store %arg4[%c3, %c0_2], %1 {strides = array<i32>} : memref<32x896xf32, #tpu.memory_space<vmem>>, vector<13x128xf32>,
    %cst = arith.constant 0.000000e+00 : f32
    %3 = vector.broadcast %cst : f32 to vector<3x128xf32>
    %c0_3 = arith.constant 0 : index
    %c0_4 = arith.constant 0 : index
    %4 = vector.load %arg4[%c0_3, %c0_4] : memref<32x896xf32, #tpu.memory_space<vmem>>, vector<3x128xf32>
    tpu.vector_store %arg4[%c0_3, %c0_4], %3 {strides = array<i32>} : memref<32x896xf32, #tpu.memory_space<vmem>>, vector<3x128xf32>,
    %c0_5 = arith.constant 0 : index
    %c16 = arith.constant 16 : index
    %c0_6 = arith.constant 0 : index
    %5 = vector.load %arg2[%c0_5, %c16, %c0_6] : memref<1x32x128xf32, #tpu.memory_space<vmem>>, vector<1x13x128xf32>
    %6 = vector.shape_cast %5 : vector<1x13x128xf32> to vector<13x128xf32>
    %c19 = arith.constant 19 : index
    %c0_7 = arith.constant 0 : index
    %7 = vector.load %arg4[%c19, %c0_7] : memref<32x896xf32, #tpu.memory_space<vmem>>, vector<13x128xf32>
    tpu.vector_store %arg4[%c19, %c0_7], %6 {strides = array<i32>} : memref<32x896xf32, #tpu.memory_space<vmem>>, vector<13x128xf32>,
    %cst_8 = arith.constant 0.000000e+00 : f32
    %8 = vector.broadcast %cst_8 : f32 to vector<3x128xf32>
    %c16_9 = arith.constant 16 : index
    %c0_10 = arith.constant 0 : index
    %9 = vector.load %arg4[%c16_9, %c0_10] : memref<32x896xf32, #tpu.memory_space<vmem>>, vector<3x128xf32>
    tpu.vector_store %arg4[%c16_9, %c0_10], %8 {strides = array<i32>} : memref<32x896xf32, #tpu.memory_space<vmem>>, vector<3x128xf32>,
    %c0_11 = arith.constant 0 : index
    %c0_12 = arith.constant 0 : index
    %c0_13 = arith.constant 0 : index
    %10 = vector.load %arg2[%c0_11, %c0_12, %c0_13] : memref<1x32x128xf32, #tpu.memory_space<vmem>>, vector<1x14x128xf32>
    %11 = vector.shape_cast %10 : vector<1x14x128xf32> to vector<14x128xf32>
    %c2 = arith.constant 2 : index
    %c128 = arith.constant 128 : index
    %12 = vector.load %arg4[%c2, %c128] : memref<32x896xf32, #tpu.memory_space<vmem>>, vector<14x128xf32>
    tpu.vector_store %arg4[%c2, %c128], %11 {strides = array<i32>} : memref<32x896xf32, #tpu.memory_space<vmem>>, vector<14x128xf32>,
    %cst_14 = arith.constant 0.000000e+00 : f32
    %13 = vector.broadcast %cst_14 : f32 to vector<2x128xf32>
    %c0_15 = arith.constant 0 : index
    %c128_16 = arith.constant 128 : index
    %14 = vector.load %arg4[%c0_15, %c128_16] : memref<32x896xf32, #tpu.memory_space<vmem>>, vector<2x128xf32>
    tpu.vector_store %arg4[%c0_15, %c128_16], %13 {strides = array<i32>} : memref<32x896xf32, #tpu.memory_space<vmem>>, vector<2x128xf32>,
    %c0_17 = arith.constant 0 : index
    %c16_18 = arith.constant 16 : index
    %c0_19 = arith.constant 0 : index
    %15 = vector.load %arg2[%c0_17, %c16_18, %c0_19] : memref<1x32x128xf32, #tpu.memory_space<vmem>>, vector<1x14x128xf32>
    %16 = vector.shape_cast %15 : vector<1x14x128xf32> to vector<14x128xf32>
    %c18 = arith.constant 18 : index
    %c128_20 = arith.constant 128 : index
    %17 = vector.load %arg4[%c18, %c128_20] : memref<32x896xf32, #tpu.memory_space<vmem>>, vector<14x128xf32>
    tpu.vector_store %arg4[%c18, %c128_20], %16 {strides = array<i32>} : memref<32x896xf32, #tpu.memory_space<vmem>>, vector<14x128xf32>,
    %cst_21 = arith.constant 0.000000e+00 : f32
    %18 = vector.broadcast %cst_21 : f32 to vector<2x128xf32>
    %c16_22 = arith.constant 16 : index
    %c128_23 = arith.constant 128 : index
    %19 = vector.load %arg4[%c16_22, %c128_23] : memref<32x896xf32, #tpu.memory_space<vmem>>, vector<2x128xf32>
    tpu.vector_store %arg4[%c16_22, %c128_23], %18 {strides = array<i32>} : memref<32x896xf32, #tpu.memory_space<vmem>>, vector<2x128xf32>,
    %c0_24 = arith.constant 0 : index
    %c0_25 = arith.constant 0 : index
    %c0_26 = arith.constant 0 : index
    %20 = vector.load %arg2[%c0_24, %c0_25, %c0_26] : memref<1x32x128xf32, #tpu.memory_space<vmem>>, vector<1x15x128xf32>
    %21 = vector.shape_cast %20 : vector<1x15x128xf32> to vector<15x128xf32>
    %c1 = arith.constant 1 : index
    %c256 = arith.constant 256 : index
    %22 = vector.load %arg4[%c1, %c256] : memref<32x896xf32, #tpu.memory_space<vmem>>, vector<15x128xf32>
    tpu.vector_store %arg4[%c1, %c256], %21 {strides = array<i32>} : memref<32x896xf32, #tpu.memory_space<vmem>>, vector<15x128xf32>,
    %cst_27 = arith.constant 0.000000e+00 : f32
    %23 = vector.broadcast %cst_27 : f32 to vector<1x128xf32>
    %c0_28 = arith.constant 0 : index
    %c256_29 = arith.constant 256 : index
    %24 = vector.load %arg4[%c0_28, %c256_29] : memref<32x896xf32, #tpu.memory_space<vmem>>, vector<1x128xf32>
    tpu.vector_store %arg4[%c0_28, %c256_29], %23 {strides = array<i32>} : memref<32x896xf32, #tpu.memory_space<vmem>>, vector<1x128xf32>,
    %c0_30 = arith.constant 0 : index
    %c16_31 = arith.constant 16 : index
    %c0_32 = arith.constant 0 : index
    %25 = vector.load %arg2[%c0_30, %c16_31, %c0_32] : memref<1x32x128xf32, #tpu.memory_space<vmem>>, vector<1x15x128xf32>
    %26 = vector.shape_cast %25 : vector<1x15x128xf32> to vector<15x128xf32>
    %c17 = arith.constant 17 : index
    %c256_33 = arith.constant 256 : index
    %27 = vector.load %arg4[%c17, %c256_33] : memref<32x896xf32, #tpu.memory_space<vmem>>, vector<15x128xf32>
    tpu.vector_store %arg4[%c17, %c256_33], %26 {strides = array<i32>} : memref<32x896xf32, #tpu.memory_space<vmem>>, vector<15x128xf32>,
    %cst_34 = arith.constant 0.000000e+00 : f32
    %28 = vector.broadcast %cst_34 : f32 to vector<1x128xf32>
    %c16_35 = arith.constant 16 : index
    %c256_36 = arith.constant 256 : index
    %29 = vector.load %arg4[%c16_35, %c256_36] : memref<32x896xf32, #tpu.memory_space<vmem>>, vector<1x128xf32>
    tpu.vector_store %arg4[%c16_35, %c256_36], %28 {strides = array<i32>} : memref<32x896xf32, #tpu.memory_space<vmem>>, vector<1x128xf32>,
    %c0_37 = arith.constant 0 : index
    %c0_38 = arith.constant 0 : index
    %c0_39 = arith.constant 0 : index
    %30 = vector.load %arg2[%c0_37, %c0_38, %c0_39] : memref<1x32x128xf32, #tpu.memory_space<vmem>>, vector<1x16x128xf32>
    %31 = vector.shape_cast %30 : vector<1x16x128xf32> to vector<16x128xf32>
    %c0_40 = arith.constant 0 : index
    %c384 = arith.constant 384 : index
    %32 = vector.load %arg4[%c0_40, %c384] : memref<32x896xf32, #tpu.memory_space<vmem>>, vector<16x128xf32>
    tpu.vector_store %arg4[%c0_40, %c384], %31 {strides = array<i32>} : memref<32x896xf32, #tpu.memory_space<vmem>>, vector<16x128xf32>,
    %c0_41 = arith.constant 0 : index
    %c16_42 = arith.constant 16 : index
    %c0_43 = arith.constant 0 : index
    %33 = vector.load %arg2[%c0_41, %c16_42, %c0_43] : memref<1x32x128xf32, #tpu.memory_space<vmem>>, vector<1x16x128xf32>
    %34 = vector.shape_cast %33 : vector<1x16x128xf32> to vector<16x128xf32>
    %c16_44 = arith.constant 16 : index
    %c384_45 = arith.constant 384 : index
    %35 = vector.load %arg4[%c16_44, %c384_45] : memref<32x896xf32, #tpu.memory_space<vmem>>, vector<16x128xf32>
    tpu.vector_store %arg4[%c16_44, %c384_45], %34 {strides = array<i32>} : memref<32x896xf32, #tpu.memory_space<vmem>>, vector<16x128xf32>,
    %c0_46 = arith.constant 0 : index
    %c1_47 = arith.constant 1 : index
    %c0_48 = arith.constant 0 : index
    %36 = vector.load %arg2[%c0_46, %c1_47, %c0_48] : memref<1x32x128xf32, #tpu.memory_space<vmem>>, vector<1x15x128xf32>
    %37 = vector.shape_cast %36 : vector<1x15x128xf32> to vector<15x128xf32>
    %c0_49 = arith.constant 0 : index
    %c512 = arith.constant 512 : index
    %38 = vector.load %arg4[%c0_49, %c512] : memref<32x896xf32, #tpu.memory_space<vmem>>, vector<15x128xf32>
    tpu.vector_store %arg4[%c0_49, %c512], %37 {strides = array<i32>} : memref<32x896xf32, #tpu.memory_space<vmem>>, vector<15x128xf32>,
    %cst_50 = arith.constant 0.000000e+00 : f32
    %39 = vector.broadcast %cst_50 : f32 to vector<1x128xf32>
    %c15 = arith.constant 15 : index
    %c512_51 = arith.constant 512 : index
    %40 = vector.load %arg4[%c15, %c512_51] : memref<32x896xf32, #tpu.memory_space<vmem>>, vector<1x128xf32>
    tpu.vector_store %arg4[%c15, %c512_51], %39 {strides = array<i32>} : memref<32x896xf32, #tpu.memory_space<vmem>>, vector<1x128xf32>,
    %c0_52 = arith.constant 0 : index
    %c17_53 = arith.constant 17 : index
    %c0_54 = arith.constant 0 : index
    %41 = vector.load %arg2[%c0_52, %c17_53, %c0_54] : memref<1x32x128xf32, #tpu.memory_space<vmem>>, vector<1x15x128xf32>
    %42 = vector.shape_cast %41 : vector<1x15x128xf32> to vector<15x128xf32>
    %c16_55 = arith.constant 16 : index
    %c512_56 = arith.constant 512 : index
    %43 = vector.load %arg4[%c16_55, %c512_56] : memref<32x896xf32, #tpu.memory_space<vmem>>, vector<15x128xf32>
    tpu.vector_store %arg4[%c16_55, %c512_56], %42 {strides = array<i32>} : memref<32x896xf32, #tpu.memory_space<vmem>>, vector<15x128xf32>,
    %cst_57 = arith.constant 0.000000e+00 : f32
    %44 = vector.broadcast %cst_57 : f32 to vector<1x128xf32>
    %c31 = arith.constant 31 : index
    %c512_58 = arith.constant 512 : index
    %45 = vector.load %arg4[%c31, %c512_58] : memref<32x896xf32, #tpu.memory_space<vmem>>, vector<1x128xf32>
    tpu.vector_store %arg4[%c31, %c512_58], %44 {strides = array<i32>} : memref<32x896xf32, #tpu.memory_space<vmem>>, vector<1x128xf32>,
    %c0_59 = arith.constant 0 : index
    %c2_60 = arith.constant 2 : index
    %c0_61 = arith.constant 0 : index
    %46 = vector.load %arg2[%c0_59, %c2_60, %c0_61] : memref<1x32x128xf32, #tpu.memory_space<vmem>>, vector<1x14x128xf32>
    %47 = vector.shape_cast %46 : vector<1x14x128xf32> to vector<14x128xf32>
    %c0_62 = arith.constant 0 : index
    %c640 = arith.constant 640 : index
    %48 = vector.load %arg4[%c0_62, %c640] : memref<32x896xf32, #tpu.memory_space<vmem>>, vector<14x128xf32>
    tpu.vector_store %arg4[%c0_62, %c640], %47 {strides = array<i32>} : memref<32x896xf32, #tpu.memory_space<vmem>>, vector<14x128xf32>,
    %cst_63 = arith.constant 0.000000e+00 : f32
    %49 = vector.broadcast %cst_63 : f32 to vector<2x128xf32>
    %c14 = arith.constant 14 : index
    %c640_64 = arith.constant 640 : index
    %50 = vector.load %arg4[%c14, %c640_64] : memref<32x896xf32, #tpu.memory_space<vmem>>, vector<2x128xf32>
    tpu.vector_store %arg4[%c14, %c640_64], %49 {strides = array<i32>} : memref<32x896xf32, #tpu.memory_space<vmem>>, vector<2x128xf32>,
    %c0_65 = arith.constant 0 : index
    %c18_66 = arith.constant 18 : index
    %c0_67 = arith.constant 0 : index
    %51 = vector.load %arg2[%c0_65, %c18_66, %c0_67] : memref<1x32x128xf32, #tpu.memory_space<vmem>>, vector<1x14x128xf32>
    %52 = vector.shape_cast %51 : vector<1x14x128xf32> to vector<14x128xf32>
    %c16_68 = arith.constant 16 : index
    %c640_69 = arith.constant 640 : index
    %53 = vector.load %arg4[%c16_68, %c640_69] : memref<32x896xf32, #tpu.memory_space<vmem>>, vector<14x128xf32>
    tpu.vector_store %arg4[%c16_68, %c640_69], %52 {strides = array<i32>} : memref<32x896xf32, #tpu.memory_space<vmem>>, vector<14x128xf32>,
    %cst_70 = arith.constant 0.000000e+00 : f32
    %54 = vector.broadcast %cst_70 : f32 to vector<2x128xf32>
    %c30 = arith.constant 30 : index
    %c640_71 = arith.constant 640 : index
    %55 = vector.load %arg4[%c30, %c640_71] : memref<32x896xf32, #tpu.memory_space<vmem>>, vector<2x128xf32>
    tpu.vector_store %arg4[%c30, %c640_71], %54 {strides = array<i32>} : memref<32x896xf32, #tpu.memory_space<vmem>>, vector<2x128xf32>,
    %c0_72 = arith.constant 0 : index
    %c3_73 = arith.constant 3 : index
    %c0_74 = arith.constant 0 : index
    %56 = vector.load %arg2[%c0_72, %c3_73, %c0_74] : memref<1x32x128xf32, #tpu.memory_space<vmem>>, vector<1x13x128xf32>
    %57 = vector.shape_cast %56 : vector<1x13x128xf32> to vector<13x128xf32>
    %c0_75 = arith.constant 0 : index
    %c768 = arith.constant 768 : index
    %58 = vector.load %arg4[%c0_75, %c768] : memref<32x896xf32, #tpu.memory_space<vmem>>, vector<13x128xf32>
    tpu.vector_store %arg4[%c0_75, %c768], %57 {strides = array<i32>} : memref<32x896xf32, #tpu.memory_space<vmem>>, vector<13x128xf32>,
    %cst_76 = arith.constant 0.000000e+00 : f32
    %59 = vector.broadcast %cst_76 : f32 to vector<3x128xf32>
    %c13 = arith.constant 13 : index
    %c768_77 = arith.constant 768 : index
    %60 = vector.load %arg4[%c13, %c768_77] : memref<32x896xf32, #tpu.memory_space<vmem>>, vector<3x128xf32>
    tpu.vector_store %arg4[%c13, %c768_77], %59 {strides = array<i32>} : memref<32x896xf32, #tpu.memory_space<vmem>>, vector<3x128xf32>,
    %c0_78 = arith.constant 0 : index
    %c19_79 = arith.constant 19 : index
    %c0_80 = arith.constant 0 : index
    %61 = vector.load %arg2[%c0_78, %c19_79, %c0_80] : memref<1x32x128xf32, #tpu.memory_space<vmem>>, vector<1x13x128xf32>
    %62 = vector.shape_cast %61 : vector<1x13x128xf32> to vector<13x128xf32>
    %c16_81 = arith.constant 16 : index
    %c768_82 = arith.constant 768 : index
    %63 = vector.load %arg4[%c16_81, %c768_82] : memref<32x896xf32, #tpu.memory_space<vmem>>, vector<13x128xf32>
    tpu.vector_store %arg4[%c16_81, %c768_82], %62 {strides = array<i32>} : memref<32x896xf32, #tpu.memory_space<vmem>>, vector<13x128xf32>,
    %cst_83 = arith.constant 0.000000e+00 : f32
    %64 = vector.broadcast %cst_83 : f32 to vector<3x128xf32>
    %c29 = arith.constant 29 : index
    %c768_84 = arith.constant 768 : index
    %65 = vector.load %arg4[%c29, %c768_84] : memref<32x896xf32, #tpu.memory_space<vmem>>, vector<3x128xf32>
    tpu.vector_store %arg4[%c29, %c768_84], %64 {strides = array<i32>} : memref<32x896xf32, #tpu.memory_space<vmem>>, vector<3x128xf32>,
    %c0_85 = arith.constant 0 : index
    %c0_86 = arith.constant 0 : index
    %66 = vector.load %arg4[%c0_85, %c0_86] : memref<32x896xf32, #tpu.memory_space<vmem>>, vector<32x896xf32>
    %67 = arith.truncf %66 : vector<32x896xf32> to vector<32x896xbf16>
    %c0_87 = arith.constant 0 : index
    %c0_88 = arith.constant 0 : index
    %68 = vector.load %arg1[%c0_87, %c0_88] : memref<896x128xbf16, #tpu.memory_space<vmem>>, vector<896x128xbf16>
    %cst_89 = arith.constant dense<0.000000e+00> : vector<32x128xf32>
    %69 = tpu.matmul %67, %68, %cst_89 {dimension_numbers = #tpu.dot_dimension_numbers<[1], [0], [0], [1], [0, 0, 1, 1], [], []>} : vector<32x896xbf16>, vector<896x128xbf16>, vector<32x128xf32> -> vector<32x128xf32>
    %70 = arith.negf %69 : vector<32x128xf32>
    %71 = math.exp %70 : vector<32x128xf32>
    %cst_90 = arith.constant 1.000000e+00 : f32
    %72 = vector.broadcast %cst_90 : f32 to vector<32x128xf32>
    %73 = arith.addf %72, %71 : vector<32x128xf32>
    %74 = arith.divf %72, %73 : vector<32x128xf32>
    %c0_91 = arith.constant 0 : index
    %c0_92 = arith.constant 0 : index
    %c0_93 = arith.constant 0 : index
    %75 = vector.load %arg3[%c0_91, %c0_92, %c0_93] : memref<1x32x128xf32, #tpu.memory_space<vmem>>, vector<1x32x128xf32>
    %76 = vector.shape_cast %75 : vector<1x32x128xf32> to vector<32x128xf32>
    %77 = vector.shape_cast %74 : vector<32x128xf32> to vector<1x32x128xf32>
    tpu.vector_store %arg3[%c0_91, %c0_92, %c0_93], %77 {strides = array<i32>} : memref<1x32x128xf32, #tpu.memory_space<vmem>>, vector<1x32x128xf32>,
    return
  }
  func.func @transform_0(%arg0: i32) -> (i32, i32) {
    %c0_i32 = arith.constant 0 : i32
    %c0_i32_0 = arith.constant 0 : i32
    %c0_i32_1 = arith.constant 0 : i32
    return %c0_i32, %c0_i32_0 : i32, i32
  }
  func.func @transform_1(%arg0: i32) -> (i32, i32, i32) {
    %c0_i32 = arith.constant 0 : i32
    %c0_i32_0 = arith.constant 0 : i32
    %c0_i32_1 = arith.constant 0 : i32
    return %arg0, %c0_i32, %c0_i32_0 : i32, i32, i32
  }
  func.func @transform_2(%arg0: i32) -> (i32, i32, i32) {
    %c0_i32 = arith.constant 0 : i32
    %c0_i32_0 = arith.constant 0 : i32
    %c0_i32_1 = arith.constant 0 : i32
    return %arg0, %c0_i32, %c0_i32_0 : i32, i32, i32
  }
}

</mosaic_0001>

<bundles_post_ra>
// kernel: tpu_custom_call.1
= control target key start
LH: loop header
LB: loop body
LE: loop exit
PB: predicated region body
PF: predicated region fallthrough
CT: control target
= control target key end

     0   :  { %7 = vsyncpa [#allocation4], 0  ;;  %s1250_s0 = inlined_call_operand.hbm [shape: bf16[896,128], index: 0, kind: input, shape index: {}]   ;;  %s1251_s1 = inlined_call_operand.hbm [shape: f32[1,32,128], index: 1, kind: input, shape index: {}]   ;;  %s1252_s2 = inlined_call_operand.hbm [shape: f32[1,32,128], index: 2, kind: output, shape index: {}]  }
   0x1   :  { %8 = vsyncpa [#allocation7], 0 }
   0x2   :  { %9 = vsyncpa [#allocation5], 0  ;;  %s1206_s9 = smov [#allocation3]  }
   0x3   :  { %s15_s10 = sshll.u32 %s1206_s9, 4  ;;  %s16_s10 = int_to_ptr.vmem [resolvable:$true] %s15_s10 }
   0x4   :  { %s1148_s11 = scalar_lea.vmem %s16_s10, 7168  ;;  %p1153_p1 = scmp.lt.s32.totalorder %s16_s10, %s16_s10 }
   0x5   :  { %p1149_p0 = scmp.ne.s32.totalorder %s16_s10, %s1148_s11  ;;  %p1154_p2 = scmp.lt.s32.totalorder %s1148_s11, %s1148_s11 }
   0x7   :  { %p1155_p3 = por %p1154_p2, %p1153_p1 }
   0x9   :  { %p1156_p4 = pnand %p1155_p3, %p1149_p0 }
   0xb   :  { %1159 = shalt.err (!%p1156_p4)
}
   0xc   :  { %s1207_s12 = smov 64   ;;  %s1208_s13 = smov 4  }
   0xd   :  { %21 = dma.hbm_to_vmem [thread:$0]  %s1250_s0, 7168, %s16_s10, [#allocation4], %s1207_s12, %s1207_s12, %s1208_s13  }
   0xe   :  { %s1209_s16 = smov [#allocation6]  }
   0xf   :  { %s27_s17 = sshll.u32 %s1209_s16, 4  ;;  %s28_s17 = int_to_ptr.vmem [resolvable:$true] %s27_s17 }
  0x10   :  { %s1168_s18 = scalar_lea.vmem %s28_s17, 512  ;;  %p1173_p6 = scmp.lt.s32.totalorder %s28_s17, %s28_s17 }
  0x11   :  { %p1169_p5 = scmp.ne.s32.totalorder %s28_s17, %s1168_s18  ;;  %p1174_p7 = scmp.lt.s32.totalorder %s1168_s18, %s1168_s18 }
  0x13   :  { %p1175_p8 = por %p1174_p7, %p1173_p6 }
  0x15   :  { %p1176_p9 = pnand %p1175_p8, %p1169_p5 }
  0x17   :  { %1179 = shalt.err (!%p1176_p9)
}
  0x18   :  { %s1210_s19 = smov 128   ;;  %s1211_s20 = smov 8  }
  0x19   :  { %33 = dma.hbm_to_vmem [thread:$0]  %s1251_s1, 512, %s28_s17, [#allocation7], %s1210_s19, %s1210_s19, %s1211_s20  }
  0x1a   :  { %1200 = dma.done.wait [#allocation4], 7168  }
  0x1b   :  { %1201 = vsyncadd [#allocation4], 4294960128 }
  0x1c   :  { %1202 = dma.done.wait [#allocation7], 512  }
  0x1d   :  { %1203 = vsyncadd [#allocation7], 4294966784  ;;  %v1212_v0 = vmov 0.0   ;;  %v1068_v1 = vld [vmem:[#allocation3 + $0x78] sm:$0xff]   ;;  %v1072_v5 = vld [vmem:[#allocation3 + $0x70] sm:$0xff]   ;;  %vm70_vm0 = vcmask 1041408  }
  0x1e   :  { %78 = vst [vmem:[#allocation2 + $0x8] sm:$0x3] %v1212_v0  ;;  %53 = vst [vmem:[#allocation2] sm:$0x7] %v1212_v0  ;;  %v1069_v2 = vld [vmem:[#allocation3 + $0xf8] sm:$0xff]   ;;  %946 = vmatprep.subr.bf16.mxu0 %v1068_v1  ;;  %v1073_v6 = vld [vmem:[#allocation3 + $0xf0] sm:$0xff]  }
  0x1f   :  { %65 = vst [vmem:[#allocation2 + $0x70] sm:$0x7] %v1212_v0  ;;  %90 = vst [vmem:[#allocation2 + $0x78] sm:$0x3] %v1212_v0  ;;  %v1070_v3 = vld [vmem:[#allocation3 + $0x38] sm:$0xff]   ;;  %974 = vmatprep.subr.bf16.mxu1 %v1069_v2  ;;  %v1074_v7 = vld [vmem:[#allocation3 + $0x30] sm:$0xff]  }
  0x20   :  { %103 = vst [vmem:[#allocation2 + $0x10] sm:$0x1] %v1212_v0  ;;  %115 = vst [vmem:[#allocation2 + $0x80] sm:$0x1] %v1212_v0  ;;  %v1071_v4 = vld [vmem:[#allocation3 + $0xb8] sm:$0xff]   ;;  %947 = vmatpush3.bf16.msra.mxu0 %v1070_v3  ;;  %v1075_v8 = vld [vmem:[#allocation3 + $0xb0] sm:$0xff]  }
  0x21   :  { %128 = vst [vmem:[#allocation2 + $0x5f] sm:$0x1] %v1212_v0  ;;  %133 = vst [vmem:[#allocation2 + $0xcf] sm:$0x1] %v1212_v0  ;;  %975 = vmatpush3.bf16.msra.mxu1 %v1071_v4  ;;  %948 = vmatprep.subr.bf16.mxu0 %v1072_v5  ;;  %v1076_v9 = vld [vmem:[#allocation3 + $0x68] sm:$0xff]   ;;  %v1080_v13 = vld [vmem:[#allocation3 + $0x60] sm:$0xff]  }
  0x22   :  { %138 = vst [vmem:[#allocation2 + $0x60] sm:$0xc0] %v1212_v0  ;;  %143 = vst [vmem:[#allocation2 + $0xd0] sm:$0xc0] %v1212_v0  ;;  %976 = vmatprep.subr.bf16.mxu1 %v1073_v6  ;;  %v1077_v10 = vld [vmem:[#allocation3 + $0xe8] sm:$0xff]   ;;  %v1081_v14 = vld [vmem:[#allocation3 + $0xe0] sm:$0xff]  }
  0x23   :  { %148 = vst [vmem:[#allocation2 + $0x68] sm:$0xe0] %v1212_v0  ;;  %153 = vst [vmem:[#allocation2 + $0xd8] sm:$0xe0] %v1212_v0  ;;  %v1078_v11 = vld [vmem:[#allocation3 + $0x28] sm:$0xff]   ;;  %v1082_v15 = vld [vmem:[#allocation3 + $0x20] sm:$0xff]  }
  0x24   :  { %949 = vmatpush3.bf16.msra.mxu0 %v1074_v7  ;;  %v1079_v12 = vld [vmem:[#allocation3 + $0xa8] sm:$0xff]   ;;  %v1083_v16 = vld [vmem:[#allocation3 + $0xa0] sm:$0xff]   ;;  %v1084_v17 = vld [vmem:[#allocation3 + $0x58] sm:$0xff]   ;;  %vm45_vm1 = vcmask 1042432   ;;  %vm95_vm2 = vcmask 1040384   ;;  %s1213_s0 = smov [#allocation8]  }
  0x25   :  { %977 = vmatpush3.bf16.msra.mxu1 %v1075_v8  ;;  %950 = vmatprep.subr.bf16.mxu0 %v1076_v9  ;;  %v1085_v18 = vld [vmem:[#allocation3 + $0xd8] sm:$0xff]   ;;  %v1088_v21 = vld [vmem:[#allocation3 + $0x50] sm:$0xff]   ;;  %v1092_v25 = vld [vmem:[#allocation3 + $0x48] sm:$0xff]   ;;  %s873_s1 = sshll.u32 %s1213_s0, 4  ;;  %s874_s1 = int_to_ptr.vmem [resolvable:$true] %s873_s1 }
  0x26   :  { %978 = vmatprep.subr.bf16.mxu1 %v1077_v10  ;;  %v1086_v19 = vld [vmem:[#allocation3 + $0x18] sm:$0xff]   ;;  %v1089_v22 = vld [vmem:[#allocation3 + $0xd0] sm:$0xff]   ;;  %v1093_v26 = vld [vmem:[#allocation3 + $0xc8] sm:$0xff]   ;;  %s1180_s23 = scalar_lea.vmem %s874_s1, 512  ;;  %p1185_p11 = scmp.lt.s32.totalorder %s874_s1, %s874_s1 }
  0x27   :  { %v1087_v20 = vld [vmem:[#allocation3 + $0x98] sm:$0xff]   ;;  %v1090_v23 = vld [vmem:[#allocation3 + $0x10] sm:$0xff]   ;;  %v1094_v27 = vld [vmem:[#allocation3 + $0x8] sm:$0xff]   ;;  %p1181_p10 = scmp.ne.s32.totalorder %s874_s1, %s1180_s23  ;;  %p1186_p12 = scmp.lt.s32.totalorder %s1180_s23, %s1180_s23 }
  0x28   :  { %951 = vmatpush3.bf16.msra.mxu0 %v1078_v11  ;;  %v1091_v24 = vld [vmem:[#allocation3 + $0x90] sm:$0xff]   ;;  %v1095_v28 = vld [vmem:[#allocation3 + $0x88] sm:$0xff]   ;;  %v1096_v29 = vld [vmem:[#allocation3 + $0x40] sm:$0xff]  }
  0x29   :  { %979 = vmatpush3.bf16.msra.mxu1 %v1079_v12  ;;  %952 = vmatprep.subr.bf16.mxu0 %v1080_v13  ;;  %v1097_v30 = vld [vmem:[#allocation3 + $0xc0] sm:$0xff]   ;;  %v67_v34 = vld [vmem:[#allocation6 + $0x8] sm:$0x3f]  ;;  %v1100_v41 = vld [vmem:[#allocation3 + $0x178] sm:$0xff]   ;;  %p1187_p13 = por %p1186_p12, %p1185_p11 }
  0x2a   :  { %980 = vmatprep.subr.bf16.mxu1 %v1081_v14  ;;  %v1098_v31 = vld [vmem:[#allocation3] sm:$0xff]   ;;  %v117_v35 = vld [vmem:[#allocation6 + $0x8] sm:$0xff]  ;;  %v72_v37 = vrot.slane %v67_v34, 6  ;;  %v1103_v49 = vld [vmem:[#allocation3 + $0x1b8] sm:$0xff]  }
  0x2b   :  { %v1099_v32 = vld [vmem:[#allocation3 + $0x80] sm:$0xff]   ;;  %v42_v39 = vld [vmem:[#allocation6 + $0x8] sm:$0x1f]  ;;  %v1101_v50 = vld [vmem:[#allocation3 + $0x138] sm:$0xff]   ;;  %p1188_p0 = pnand %p1187_p13, %p1181_p10 }
  0x2c   :  { %953 = vmatpush3.bf16.msra.mxu0 %v1082_v15  ;;  %v66_v33 = vld [vmem:[#allocation6] sm:$0xff]  ;;  %v47_v42 = vrot.slane %v42_v39, 5  ;;  %v92_v43 = vld [vmem:[#allocation6 + $0x8] sm:$0x7f]  ;;  %v1102_v53 = vld [vmem:[#allocation3 + $0x170] sm:$0xff]  }
  0x2d   :  { %981 = vmatpush3.bf16.msra.mxu1 %v1083_v16  ;;  %954 = vmatprep.subr.bf16.mxu0 %v1084_v17  ;;  %v71_v36 = vrot.slane %v66_v33, 6  ;;  %v185_v38 = vpack.c.bf16 %v117_v35, %v66_v33  ;;  %v46_v40 = vrot.slane %v66_v33, 5  ;;  %v96_v44 = vrot.slane %v66_v33, 7  ;;  %v1106_v58 = vld [vmem:[#allocation3 + $0x1b0] sm:$0xff]   ;;  %v1105_v60 = vld [vmem:[#allocation3 + $0x168] sm:$0xff]   ;;  %v121_v3 = vld [vmem:[#allocation6 + $0x18] sm:$0xff] }
  0x2e   :  { %982 = vmatprep.subr.bf16.mxu1 %v1085_v18  ;;  %v97_v46 = vrot.slane %v92_v43, 7  ;;  %v1104_v59 = vld [vmem:[#allocation3 + $0x130] sm:$0xff]   ;;  %v1109_v61 = vld [vmem:[#allocation3 + $0x1a8] sm:$0xff]   ;;  %v80_v63 = vld [vmem:[#allocation6 + $0x18] sm:$0x3f] }
  0x2f   :  { %v73_v45 = vsel %vm70_vm0, %v71_v36, %v72_v37  ;;  %76 = vst [vmem:[#allocation2 + $0x8] sm:$0xfc] %v71_v36  ;;  %725 = vmatprep.mubr.bf16.mxu1 %v185_v38  ;;  %51 = vst [vmem:[#allocation2] sm:$0xf8] %v46_v40  ;;  %v48_v47 = vsel %vm45_vm1, %v46_v40, %v47_v42  ;;  %v79_v62 = vld [vmem:[#allocation6 + $0x10] sm:$0xff]  ;;  %v1107_v0 = vld [vmem:[#allocation3 + $0x128] sm:$0xff]  }
  0x30   :  { %955 = vmatpush3.bf16.msra.mxu0 %v1086_v19  ;;  %101 = vst [vmem:[#allocation2 + $0x10] sm:$0xfe] %v96_v44  ;;  %v98_v48 = vsel %vm95_vm2, %v96_v44, %v97_v46  ;;  %v83_v1 = vrot.slane %v79_v62, 6  ;;  %v84_v2 = vrot.slane %v80_v63, 6  ;;  %v192_v4 = vpack.c.bf16 %v121_v3, %v79_v62  ;;  %v55_v5 = vld [vmem:[#allocation6 + $0x18] sm:$0x1f] }
  0x31   :  { %983 = vmatpush3.bf16.msra.mxu1 %v1087_v20  ;;  %956 = vmatprep.subr.bf16.mxu0 %v1088_v21  ;;  %v58_v6 = vrot.slane %v79_v62, 5  ;;  %v108_v7 = vrot.slane %v79_v62, 7  ;;  %v1108_v8 = vld [vmem:[#allocation3 + $0x160] sm:$0xff]   ;;  %v59_v10 = vrot.slane %v55_v5, 5  ;;  %v105_v11 = vld [vmem:[#allocation6 + $0x18] sm:$0x7f] }
  0x32   :  { %984 = vmatprep.subr.bf16.mxu1 %v1089_v22  ;;  %v85_v9 = vsel %vm70_vm0, %v83_v1, %v84_v2  ;;  %88 = vst [vmem:[#allocation2 + $0x78] sm:$0xfc] %v83_v1  ;;  %v1112_v12 = vld [vmem:[#allocation3 + $0x1a0] sm:$0xff]   ;;  %v109_v13 = vrot.slane %v105_v11, 7  ;;  %v1111_v17 = vld [vmem:[#allocation3 + $0x158] sm:$0xff]   ;;  %v1114_v21 = vld [vmem:[#allocation3 + $0x150] sm:$0xff]  }
  0x33   :  { %63 = vst [vmem:[#allocation2 + $0x70] sm:$0xf8] %v58_v6  ;;  %113 = vst [vmem:[#allocation2 + $0x80] sm:$0xfe] %v108_v7  ;;  %v60_v14 = vsel %vm45_vm1, %v58_v6, %v59_v10  ;;  %v1110_v15 = vld [vmem:[#allocation3 + $0x120] sm:$0xff]   ;;  %v1115_v18 = vld [vmem:[#allocation3 + $0x198] sm:$0xff]  }
  0x34   :  { %957 = vmatpush3.bf16.msra.mxu0 %v1090_v23  ;;  %v110_v16 = vsel %vm95_vm2, %v108_v7, %v109_v13  ;;  %v1113_v19 = vld [vmem:[#allocation3 + $0x118] sm:$0xff]   ;;  %v125_v33 = vld [vmem:[#allocation6 + $0x9] sm:$0x7f]  ;;  %v1120_v44 = vld [vmem:[#allocation3 + $0x140] sm:$0xff]  }
  0x35   :  { %985 = vmatpush3.bf16.msra.mxu1 %v1091_v24  ;;  %958 = vmatprep.subr.bf16.mxu0 %v1092_v25  ;;  %v1121_v34 = vld [vmem:[#allocation3 + $0x188] sm:$0xff]   ;;  %127 = vst [vmem:[#allocation2 + $0x58] sm:$0x7f] %v125_v33  ;;  %v149_v37 = vld [vmem:[#allocation6 + $0x13] sm:$0xff]  ;;  %v150_v38 = vld [vmem:[#allocation6 + $0x1b] sm:$0x1f] }
  0x36   :  { %986 = vmatprep.subr.bf16.mxu1 %v1093_v26  ;;  %v155_v51 = vld [vmem:[#allocation2 + $0x8] sm:$0xff]  ;;  %v154_v52 = vld [vmem:[#allocation2] sm:$0xff]  ;;  %152 = vst [vmem:[#allocation2 + $0xd8] sm:$0x1f] %v150_v38  ;;  %v139_v39 = vld [vmem:[#allocation6 + $0x12] sm:$0xff] }
  0x37   :  { %v183_v54 = vpack.c.bf16 %v73_v45, %v155_v51  ;;  %v182_v55 = vpack.c.bf16 %v48_v47, %v154_v52  ;;  %v156_v56 = vld [vmem:[#allocation2 + $0x10] sm:$0xff]  ;;  %v144_v35 = vld [vmem:[#allocation6 + $0x3] sm:$0xff]  ;;  %v145_v36 = vld [vmem:[#allocation6 + $0xb] sm:$0x1f] }
  0x38   :  { %959 = vmatpush3.bf16.msra.mxu0 %v1094_v27  ;;  %v184_v57 = vpack.c.bf16 %v98_v48, %v156_v56  ;;  %v1118_v27 = vld [vmem:[#allocation3 + $0x190] sm:$0xff]   ;;  %147 = vst [vmem:[#allocation2 + $0x68] sm:$0x1f] %v145_v36  ;;  %v140_v40 = vld [vmem:[#allocation6 + $0x1a] sm:$0x3f]  ;;  %v1119_v43 = vld [vmem:[#allocation3 + $0x108] sm:$0xff]  }
  0x39   :  { %987 = vmatpush3.bf16.msra.mxu1 %v1095_v28  ;;  %960 = vmatprep.subr.bf16.mxu0 %v1096_v29  ;;  %v169_v20 = vld [vmem:[#allocation2 + $0x78] sm:$0xff]  ;;  %v1116_v28 = vld [vmem:[#allocation3 + $0x110] sm:$0xff]   ;;  %v134_v29 = vld [vmem:[#allocation6 + $0x2] sm:$0xff]  ;;  %142 = vst [vmem:[#allocation2 + $0xd0] sm:$0x3f] %v140_v40 }
  0x3a   :  { %988 = vmatprep.subr.bf16.mxu1 %v1097_v30  ;;  %676 = vmatprep.mubr.bf16.mxu0 %v183_v54  ;;  %v190_v22 = vpack.c.bf16 %v85_v9, %v169_v20  ;;  %v168_v23 = vld [vmem:[#allocation2 + $0x70] sm:$0xff]  ;;  %v170_v24 = vld [vmem:[#allocation2 + $0x80] sm:$0xff]  ;;  %v135_v30 = vld [vmem:[#allocation6 + $0xa] sm:$0x3f] }
  0x3b   :  { %v189_v25 = vpack.c.bf16 %v60_v14, %v168_v23  ;;  %v191_v26 = vpack.c.bf16 %v110_v16, %v170_v24  ;;  %137 = vst [vmem:[#allocation2 + $0x60] sm:$0x3f] %v135_v30  ;;  %v130_v42 = vld [vmem:[#allocation6 + $0x19] sm:$0x7f]  ;;  %v1123_v46 = vld [vmem:[#allocation3 + $0x180] sm:$0xff]  }
  0x3c   :  { %961 = vmatpush3.bf16.msra.mxu0 %v1098_v31  ;;  %v1117_v31 = vld [vmem:[#allocation3 + $0x148] sm:$0xff]   ;;  %132 = vst [vmem:[#allocation2 + $0xc8] sm:$0x7f] %v130_v42  ;;  %v1122_v48 = vld [vmem:[#allocation3 + $0x100] sm:$0xff]  }
  0x3d   :  { %989 = vmatpush3.bf16.msra.mxu1 %v1099_v32  ;;  %1002 = vmatprep.subr.bf16.mxu0 %v1100_v41  ;;  %v124_v32 = vld [vmem:[#allocation6 + $0x1] sm:$0xff]  ;;  %v129_v41 = vld [vmem:[#allocation6 + $0x11] sm:$0xff] }
  0x3e   :  { %1040 = vmatprep.subr.bf16.mxu1 %v1103_v49  ;;  %v181_v51 = vld [vmem:[#allocation2 + $0xd8] sm:$0xff] }
  0x3f   :  { %677 = vmatmul.mubr.bf16.vlgmr.msra.gmra.mxu0 %v182_v55  ;;  %v195_v55 = vpack.c.bf16 %v181_v51, %v149_v37 }
  0x40   :  { %726 = vmatmul.mubr.bf16.vlgmr.msra.gmra.mxu1 %v184_v57  ;;  %1003 = vmatpush3.bf16.msra.mxu0 %v1101_v50  ;;  %v167_v50 = vld [vmem:[#allocation2 + $0x68] sm:$0xff] }
  0x41   :  { %1041 = vmatpush3.bf16.msra.mxu1 %v1103_v49  ;;  %1004 = vmatprep.subr.bf16.mxu0 %v1102_v53  ;;  %v165_v49 = vld [vmem:[#allocation2 + $0x58] sm:$0xff]  ;;  %v188_v52 = vpack.c.bf16 %v167_v50, %v144_v35  ;;  %v180_v53 = vld [vmem:[#allocation2 + $0xd0] sm:$0xff] }
  0x42   :  { %1042 = vmatprep.subr.bf16.mxu1 %v1106_v58  ;;  %733 = vmatprep.mubr.bf16.mxu1 %v192_v4  ;;  %v166_v45 = vld [vmem:[#allocation2 + $0x60] sm:$0xff]  ;;  %v186_v54 = vpack.c.bf16 %v165_v49, %v124_v32  ;;  %v194_v56 = vpack.c.bf16 %v180_v53, %v139_v39 }
  0x43   :  { %684 = vmatprep.mubr.bf16.mxu0 %v190_v22  ;;  %v187_v47 = vpack.c.bf16 %v166_v45, %v134_v29  ;;  %v179_v57 = vld [vmem:[#allocation2 + $0xc8] sm:$0xff] }
  0x44   :  { %1005 = vmatpush3.bf16.msra.mxu0 %v1104_v59 }
  0x45   :  { %1043 = vmatpush3.bf16.msra.mxu1 %v1106_v58  ;;  %1006 = vmatprep.subr.bf16.mxu0 %v1105_v60  ;;  %v193_v58 = vpack.c.bf16 %v179_v57, %v129_v41 }
  0x46   :  { %1044 = vmatprep.subr.bf16.mxu1 %v1109_v61 }
  0x47   :  { %685 = vmatmul.mubr.bf16.gmra.mxu0 %v189_v25 }
  0x48   :  { %1007 = vmatpush3.bf16.msra.mxu0 %v1107_v0  ;;  %734 = vmatmul.mubr.bf16.gmra.mxu1 %v191_v26 }
  0x49   :  { %1045 = vmatpush3.bf16.msra.mxu1 %v1109_v61  ;;  %1008 = vmatprep.subr.bf16.mxu0 %v1108_v8 }
  0x4a   :  { %1046 = vmatprep.subr.bf16.mxu1 %v1112_v12  ;;  %774 = vmatprep.mubr.bf16.mxu0 %v187_v47 }
  0x4b   :  { %1056 = vmatprep.mubr.bf16.mxu1 %v188_v52 }
  0x4c   :  { %1009 = vmatpush3.bf16.msra.mxu0 %v1110_v15 }
  0x4d   :  { %1047 = vmatpush3.bf16.msra.mxu1 %v1112_v12  ;;  %1010 = vmatprep.subr.bf16.mxu0 %v1111_v17 }
  0x4e   :  { %1048 = vmatprep.subr.bf16.mxu1 %v1115_v18 }
  0x50   :  { %1011 = vmatpush3.bf16.msra.mxu0 %v1113_v19 }
  0x51   :  { %1049 = vmatpush3.bf16.msra.mxu1 %v1115_v18  ;;  %1012 = vmatprep.subr.bf16.mxu0 %v1114_v21 }
  0x52   :  { %1050 = vmatprep.subr.bf16.mxu1 %v1118_v27 }
  0x54   :  { %1013 = vmatpush3.bf16.msra.mxu0 %v1116_v28 }
  0x55   :  { %1051 = vmatpush3.bf16.msra.mxu1 %v1118_v27  ;;  %1014 = vmatprep.subr.bf16.mxu0 %v1117_v31 }
  0x56   :  { %1052 = vmatprep.subr.bf16.mxu1 %v1121_v34 }
  0x58   :  { %1015 = vmatpush3.bf16.msra.mxu0 %v1119_v43 }
  0x59   :  { %1053 = vmatpush3.bf16.msra.mxu1 %v1121_v34  ;;  %1016 = vmatprep.subr.bf16.mxu0 %v1120_v44 }
  0x5a   :  { %1054 = vmatprep.subr.bf16.mxu1 %v1123_v46 }
  0x5c   :  { %1017 = vmatpush3.bf16.msra.mxu0 %v1122_v48 }
  0x5d   :  { %1055 = vmatpush3.bf16.msra.mxu1 %v1123_v46 }
  0x5f   :  { %775 = vmatmul.mubr.bf16.vlgmr.msra.gmra.mxu0 %v186_v54 }
  0x60   :  { %1057 = vmatmul.mubr.bf16.vlgmr.msra.gmra.mxu1 %v195_v55  ;;  %782 = vmatprep.mubr.bf16.mxu0 %v194_v56 }
  0x67   :  { %783 = vmatmul.mubr.bf16.gmra.mxu0 %v193_v58 }
  0xff   :  { %v962_v59 = vpop.f32.mrf.mxu0 }
 0x100   :  { %v990_v60 = vpop.f32.mrf.mxu1 }
 0x101   :  { %v963_v61 = vpop.f32.mrf.mxu0 }
 0x102   :  { %v991_v62 = vpop.f32.mrf.mxu1  ;;  %v964_v11 = vadd.f32 %v963_v61, %v962_v59 }
 0x103   :  { %v965_v63 = vpop.f32.mrf.mxu0  ;;  %v992_v12 = vadd.f32 %v991_v62, %v990_v60 }
 0x104   :  { %v993_v0 = vpop.f32.mrf.mxu1 }
 0x105   :  { %v966_v1 = vpop.f32.mrf.mxu0  ;;  %v728_v17 = vadd.f32 %v992_v12, %v964_v11 }
 0x106   :  { %v994_v2 = vpop.f32.mrf.mxu1  ;;  %v967_v18 = vadd.f32 %v966_v1, %v965_v63 }
 0x107   :  { %v968_v3 = vpop.f32.mrf.mxu0  ;;  %v995_v19 = vadd.f32 %v994_v2, %v993_v0 }
 0x108   :  { %v996_v4 = vpop.f32.mrf.mxu1 }
 0x109   :  { %v969_v5 = vpop.f32.mrf.mxu0  ;;  %v731_v27 = vadd.f32 %v995_v19, %v967_v18 }
 0x10a   :  { %v997_v6 = vpop.f32.mrf.mxu1  ;;  %v970_v24 = vadd.f32 %v969_v5, %v968_v3 }
 0x10b   :  { %v971_v7 = vpop.f32.mrf.mxu0  ;;  %v998_v25 = vadd.f32 %v997_v6, %v996_v4 }
 0x10c   :  { %v999_v8 = vpop.f32.mrf.mxu1 }
 0x10d   :  { %v972_v9 = vpop.f32.mrf.mxu0  ;;  %v736_v34 = vadd.f32 %v998_v25, %v970_v24 }
 0x10e   :  { %v1000_v10 = vpop.f32.mrf.mxu1  ;;  %v973_v35 = vadd.f32 %v972_v9, %v971_v7 }
 0x10f   :  { %v1001_v37 = vadd.f32 %v1000_v10, %v999_v8 }
 0x111   :  { %v739_v44 = vadd.f32 %v1001_v37, %v973_v35 }
 0x11f   :  { %v1018_v13 = vpop.f32.mrf.mxu0 }
 0x120   :  { %v1058_v14 = vpop.f32.mrf.mxu1 }
 0x121   :  { %v1019_v15 = vpop.f32.mrf.mxu0 }
 0x122   :  { %v825_v16 = vpop.f32.mrf.mxu1  ;;  %v1020_v20 = vadd.f32 %v1019_v15, %v1018_v13 }
 0x123   :  { %v1021_v21 = vpop.f32.mrf.mxu0 }
 0x124   :  { %v1059_v22 = vpop.f32.mrf.mxu1  ;;  %v777_v23 = vadd.f32 %v1020_v20, %v728_v17 }
 0x125   :  { %v1022_v26 = vpop.f32.mrf.mxu0 }
 0x126   :  { %v1023_v28 = vadd.f32 %v1022_v26, %v1021_v21  ;;  %v826_v29 = vadd.f32 %v825_v16, %v777_v23  ;;  %v828_v31 = vpop.f32.mrf.mxu1 }
 0x127   :  { %v1024_v30 = vpop.f32.mrf.mxu0 }
 0x128   :  { %v942_v32 = vmul.f32 -1.442695, %v826_v29  ;;  %v780_v33 = vadd.f32 %v1023_v28, %v731_v27 }
 0x129   :  { %v1025_v36 = vpop.f32.mrf.mxu0 }
 0x12a   :  { %1124 = vpow2.f32 %v942_v32  ;;  %v1026_v38 = vadd.f32 %v1025_v36, %v1024_v30  ;;  %v829_v39 = vadd.f32 %v828_v31, %v780_v33 }
 0x12b   :  { %v1027_v40 = vpop.f32.mrf.mxu0 }
 0x12c   :  { %v785_v41 = vadd.f32 %v1026_v38, %v736_v34  ;;  %v943_v42 = vmul.f32 -1.442695, %v829_v39 }
 0x12d   :  { %v1028_v43 = vpop.f32.mrf.mxu0 }
 0x12e   :  { %v834_v45 = vadd.f32 %v1058_v14, %v785_v41  ;;  %1126 = vpow2.f32 %v943_v42  ;;  %v1029_v46 = vadd.f32 %v1028_v43, %v1027_v40 }
 0x130   :  { %v944_v47 = vmul.f32 -1.442695, %v834_v45  ;;  %v788_v48 = vadd.f32 %v1029_v46, %v739_v44 }
 0x132   :  { %1128 = vpow2.f32 %v944_v47  ;;  %v837_v49 = vadd.f32 %v1059_v22, %v788_v48 }
 0x134   :  { %v945_v50 = vmul.f32 -1.442695, %v837_v49 }
 0x136   :  { %1130 = vpow2.f32 %v945_v50 }
 0x137   :  { %v1125_v51 = vpop.eup %1124 }
 0x138   :  { %v852_v52 = vadd.f32 1.0, %v1125_v51 }
 0x13a   :  { %1132 = vrcp.f32 %v852_v52 }
 0x13b   :  { %v1127_v53 = vpop.eup %1126 }
 0x13c   :  { %v853_v54 = vadd.f32 1.0, %v1127_v53 }
 0x13e   :  { %1134 = vrcp.f32 %v853_v54 }
 0x13f   :  { %v1129_v55 = vpop.eup %1128 }
 0x140   :  { %v854_v56 = vadd.f32 1.0, %v1129_v55 }
 0x142   :  { %1136 = vrcp.f32 %v854_v56 }
 0x143   :  { %v1131_v57 = vpop.eup %1130 }
 0x144   :  { %v855_v58 = vadd.f32 1.0, %v1131_v57 }
 0x146   :  { %1138 = vrcp.f32 %v855_v58 }
 0x147   :  { %v1133_v59 = vpop.eup %1132 }
 0x148   :  { %864 = vst [vmem:[#allocation8] sm:$0xff] %v1133_v59 }
 0x14b   :  { %v1135_v60 = vpop.eup %1134 }
 0x14c   :  { %865 = vst [vmem:[#allocation8 + $0x8] sm:$0xff] %v1135_v60 }
 0x14f   :  { %v1137_v61 = vpop.eup %1136 }
 0x150   :  { %866 = vst [vmem:[#allocation8 + $0x10] sm:$0xff] %v1137_v61 }
 0x153   :  { %v1139_v62 = vpop.eup %1138 }
 0x154   :  { %867 = vst [vmem:[#allocation8 + $0x18] sm:$0xff] %v1139_v62 }
 0x155   :  { %1191 = shalt.err (!%p1188_p0)
}
 0x156   :  { %879 = dma.vmem_to_hbm [thread:$0]  %s874_s1, 512, %s1252_s2, [#allocation5], %s1210_s19, %s1210_s19, %s1211_s20  }
 0x157   :  { %1204 = dma.done.wait [#allocation5], 512  }
 0x158   :  { %1205 = vsyncadd [#allocation5], 4294966784 }
 0x159   :  { %883 = vsyncpa [#allocation4], 1 }
 0x15a   :  { %884 = vsyncpa [#allocation7], 1 }
 0x15b   :  { %885 = vsyncpa [#allocation5], 1 }

</bundles_post_ra>
